<compile_context>
chip_gen: v5e
topology: v5e:2x2
jax: 0.10.0
libtpu: 0.0.40
codegen_flags: <defaults>
</compile_context>

<pallas_src>
import jax
import jax.numpy as jnp
from jax.experimental import pallas as pl
from jax.experimental.pallas import tpu as pltpu


def _locked_dropout_kernel(x_ref, m_ref, o_ref):
    # x_ref: (tt, tn) slab of timesteps; m_ref: (1, tn) scaled f32 mask.
    # Multiply in f32 (mask dtype) and cast once back to the output dtype.
    o_ref[...] = (x_ref[...] * m_ref[...]).astype(o_ref.dtype)


def _sublane_rows(itemsize):
    # Native packed sublane tile per dtype width: f32 -> 8, bf16 -> 16, i8 -> 32.
    return {4: 8, 2: 16, 1: 32}.get(itemsize, 8)


def _chip_block_budget():
    """Return (per-block target bytes, vmem_limit_bytes or None) for this TPU."""
    try:
        kind = jax.devices()[0].device_kind.lower()
    except Exception:
        kind = ""
    if "v7" in kind:
        # 3.2 TB/s HBM, 64 MiB physical VMEM.  4 x 8 MiB double-buffered
        # x/out blocks (+ mask) ~= 34 MiB > the 32 MiB default scoped limit,
        # so raise it explicitly while leaving headroom below 64 MiB.
        return 8 << 20, 48 << 20
    if "v6" in kind or "trillium" in kind:
        return 4 << 20, 32 << 20       # 16 MiB of buffers fits the 32 MiB default
    if "v5" in kind:
        return 2 << 20, 16 << 20       # v5e default scoped VMEM is only 16 MiB
    return 2 << 20, None               # unknown chip: conservative, keep defaults


def _choose_block(n_rows, n_cols, itemsize, target_bytes):
    """Pick (block_rows, block_cols) for the flattened (T, B*H) layout.

    Keeps stores lane-dense (block_cols a multiple of 128 or the full width)
    and block_rows aligned to the dtype's packed sublane count, while the
    double-buffered x-in + x-out blocks stay within ~4x target_bytes of VMEM
    (the mask's two small buffers are covered by the remaining headroom).
    """
    sub = _sublane_rows(itemsize)
    row_bytes = n_cols * itemsize

    # Preferred: full-width (lane-dense) rows, tile only over timesteps.
    # Also forced when n_cols is not a 128 multiple -- the only legal
    # lane-dense choice without padding (pad H upstream if that matters;
    # padding here would cost O(T*B*H) extra bandwidth).
    if n_cols % 128 != 0 or sub * row_bytes <= target_bytes:
        rows = max(1, target_bytes // max(1, row_bytes))
        if rows >= n_rows:
            return n_rows, n_cols                 # full extent -> always legal
        rows = max(sub, (rows // sub) * sub)      # dtype-aware sublane multiple
        return min(rows, n_rows), n_cols

    # Huge rows: also split the lane axis (safety valve for the VMEM budget).
    rows = n_rows if n_rows <= sub else sub
    cols = max(128, (target_bytes // (rows * itemsize)) // 128 * 128)
    return rows, min(cols, n_cols)


def locked_dropout(x, seed, dropout=0.5, training=True):
    """Pallas implementation of LockedDropout.forward(x, dropout)."""
    if (not training) or (not dropout):
        return x
    if not (0.0 < dropout < 1.0):
        # dropout == 1.0 would give mask = 0/0 = NaN (as in PyTorch); reject.
        raise ValueError(f"dropout must be in [0, 1), got {dropout}")
    keep_prob = 1.0 - dropout
    T, B, H = x.shape
    BH = B * H

    # One (1, B*H) mask, locked across T, scale folded in, kept in f32.
    # NOTE: callers must thread a fresh seed per training step for new masks.
    key = jax.random.PRNGKey(seed)
    mask = jax.random.bernoulli(key, keep_prob, (1, BH)).astype(jnp.float32)
    mask = mask * jnp.float32(1.0 / keep_prob)

    x2 = x.reshape(T, BH)
    target_bytes, vmem_limit = _chip_block_budget()
    tt, tn = _choose_block(T, BH, x2.dtype.itemsize, target_bytes)
    grid = (pl.cdiv(T, tt), pl.cdiv(BH, tn))

    out = pl.pallas_call(
        _locked_dropout_kernel,
        out_shape=jax.ShapeDtypeStruct((T, BH), x.dtype),
        grid_spec=pl.GridSpec(
            grid=grid,
            in_specs=[
                pl.BlockSpec((tt, tn), lambda i, j: (i, j)),   # x timestep slab
                # Mask block index is constant along T, so it only re-fetches
                # when the lane slab changes.  (pl.Buffered(1) would also drop
                # its redundant second buffer; its cost is already covered by
                # the block budget, so we keep the default for compile-safety
                # across generations.)
                pl.BlockSpec((1, tn), lambda i, j: (0, j)),
            ],
            out_specs=pl.BlockSpec((tt, tn), lambda i, j: (i, j)),
        ),
        compiler_params=pltpu.CompilerParams(
            # Both axes are independent blocks.
            # TODO(synk): profile on v7x; if the grid isn't sharded across both
            # TensorCores, switch this axis to pltpu.CORE_PARALLEL.
            dimension_semantics=("parallel", "parallel"),
            vmem_limit_bytes=vmem_limit,
        ),
    )(x2, mask)
    return out.reshape(T, B, H)


if __name__ == "__main__":
    key = jax.random.PRNGKey(0)
    T, B, H = 8, 4, 128
    x = jax.random.normal(key, (T, B, H), dtype=jnp.float32)

    dropout = 0.5
    y = locked_dropout(x, seed=42, dropout=dropout, training=True)
    y = jax.block_until_ready(y)

    # --- sanity checks -----------------------------------------------------
    # 1) eval / dropout=0 paths are identity
    assert bool(jnp.all(locked_dropout(x, 42, dropout, training=False) == x))
    assert bool(jnp.all(locked_dropout(x, 42, 0.0, training=True) == x))

    # 2) mask is locked across the sequence axis: drop pattern identical per t
    drop_pattern = (y == 0.0)
    assert bool(jnp.all(drop_pattern == drop_pattern[0:1])), "mask not locked"

    # 3) some elements dropped, some kept (dropout=0.5)
    n_dropped = int(jnp.sum(drop_pattern[0]))
    assert 0 < n_dropped < B * H, "degenerate mask"

    # 4) kept entries are scaled by 1/(1-dropout)
    kept = ~drop_pattern
    scale = 1.0 / (1.0 - dropout)
    assert bool(jnp.all(jnp.abs(jnp.where(kept, y - scale * x, 0.0)) < 1e-5))

    # 5) exact match against a plain-JAX reference using the same mask
    mask_ref = jax.random.bernoulli(
        jax.random.PRNGKey(42), 1.0 - dropout, (1, B * H)
    ).astype(jnp.float32) / (1.0 - dropout)
    y_ref = (x.reshape(T, B * H) * mask_ref).reshape(T, B, H)
    assert bool(jnp.all(jnp.abs(y - y_ref) < 1e-6)), "mismatch vs JAX reference"

    print("KERNEL_OK")
</pallas_src>

<mosaic_0001>
module attributes {stable_mosaic.version = 11 : i64} {
  func.func @_locked_dropout_kernel(%arg0: i32, %arg1: i32, %arg2: memref<8x512xf32, #tpu.memory_space<vmem>>, %arg3: memref<1x512xf32, #tpu.memory_space<vmem>>, %arg4: memref<8x512xf32, #tpu.memory_space<vmem>>) attributes {dimension_semantics = [#tpu.dimension_semantics<parallel>, #tpu.dimension_semantics<parallel>], iteration_bounds = array<i64: 1, 1>, scalar_prefetch = 0 : i64, scratch_operands = 0 : i64, tpu.core_type = #tpu.core_type<tc>, window_params = [{transform_indices = @transform_0, window_bounds = array<i64: 8, 512>}, {transform_indices = @transform_1, window_bounds = array<i64: 1, 512>}, {transform_indices = @transform_2, window_bounds = array<i64: 8, 512>}]} {
    %c0 = arith.constant 0 : index
    %c0_0 = arith.constant 0 : index
    %0 = vector.load %arg2[%c0, %c0_0] : memref<8x512xf32, #tpu.memory_space<vmem>>, vector<8x512xf32>
    %c0_1 = arith.constant 0 : index
    %c0_2 = arith.constant 0 : index
    %1 = vector.load %arg3[%c0_1, %c0_2] : memref<1x512xf32, #tpu.memory_space<vmem>>, vector<1x512xf32>
    %2 = vector.broadcast %1 : vector<1x512xf32> to vector<8x512xf32>
    %3 = arith.mulf %0, %2 : vector<8x512xf32>
    %c0_3 = arith.constant 0 : index
    %c0_4 = arith.constant 0 : index
    %4 = vector.load %arg4[%c0_3, %c0_4] : memref<8x512xf32, #tpu.memory_space<vmem>>, vector<8x512xf32>
    tpu.vector_store %arg4[%c0_3, %c0_4], %3 {strides = array<i32>} : memref<8x512xf32, #tpu.memory_space<vmem>>, vector<8x512xf32>,
    return
  }
  func.func @transform_0(%arg0: i32, %arg1: i32) -> (i32, i32) {
    %c0_i32 = arith.constant 0 : i32
    return %arg0, %arg1 : i32, i32
  }
  func.func @transform_1(%arg0: i32, %arg1: i32) -> (i32, i32) {
    %c0_i32 = arith.constant 0 : i32
    %c0_i32_0 = arith.constant 0 : i32
    return %c0_i32, %arg1 : i32, i32
  }
  func.func @transform_2(%arg0: i32, %arg1: i32) -> (i32, i32) {
    %c0_i32 = arith.constant 0 : i32
    return %arg0, %arg1 : i32, i32
  }
}

</mosaic_0001>

<bundles_post_ra>
// kernel: tpu_custom_call.1
= control target key start
LH: loop header
LB: loop body
LE: loop exit
PB: predicated region body
PF: predicated region fallthrough
CT: control target
= control target key end

     0   :  { %7 = vsyncpa [#allocation3], 0  ;;  %s188_s0 = inlined_call_operand.hbm [shape: f32[8,512], index: 0, kind: input, shape index: {}]   ;;  %s189_s1 = inlined_call_operand.hbm [shape: f32[1,512], index: 1, kind: input, shape index: {}]   ;;  %s190_s2 = inlined_call_operand.hbm [shape: f32[8,512], index: 2, kind: output, shape index: {}]  }
   0x1   :  { %8 = vsyncpa [#allocation6], 0 }
   0x2   :  { %9 = vsyncpa [#allocation4], 0  ;;  %s15_s11 = sshll.u32 %s188_s0, 4  ;;  %s161_s12 = smov [#allocation2]   ;;  %s16_s11 = int_to_ptr.hbm [resolvable:$true] %s15_s11 }
   0x3   :  { %s17_s13 = sshll.u32 %s161_s12, 4  ;;  %s26_s16 = sshll.u32 %s189_s1, 4  ;;  %s18_s13 = int_to_ptr.vmem [resolvable:$true] %s17_s13  ;;  %s27_s16 = int_to_ptr.hbm [resolvable:$true] %s26_s16 }
   0x4   :  { %20 = dma.hbm_to_vmem [thread:$0]  %s16_s11, 512, %s18_s13, [#allocation3]  }
   0x5   :  { %s162_s17 = smov [#allocation5]  }
   0x6   :  { %s28_s18 = sshll.u32 %s162_s17, 4  ;;  %s29_s18 = int_to_ptr.vmem [resolvable:$true] %s28_s18 }
   0x7   :  { %31 = dma.hbm_to_vmem [thread:$0]  %s27_s16, 64, %s29_s18, [#allocation6]  }
   0x8   :  { %155 = dma.done.wait [#allocation3], 512  }
   0x9   :  { %156 = vsyncadd [#allocation3], 4294966784 }
   0xa   :  { %157 = dma.done.wait [#allocation6], 64  }
   0xb   :  { %158 = vsyncadd [#allocation6], 4294967232  ;;  %v40_v0 = vld [vmem:[#allocation2] sm:$0xff]  ;;  %v41_v2 = vld [vmem:[#allocation2 + $0x8] sm:$0xff]  ;;  %s163_s0 = smov [#allocation7]   ;;  %s69_s21 = sshll.u32 %s190_s2, 4  ;;  %s70_s21 = int_to_ptr.hbm [resolvable:$true] %s69_s21 }
   0xc   :  { %v44_v1 = vld [vmem:[#allocation5] sm:$0xf]  ;;  %v42_v5 = vld [vmem:[#allocation2 + $0x10] sm:$0xff]  ;;  %v43_v7 = vld [vmem:[#allocation2 + $0x18] sm:$0xff]  ;;  %s67_s1 = sshll.u32 %s163_s0, 4  ;;  %s68_s1 = int_to_ptr.vmem [resolvable:$true] %s67_s1 }
   0xd   :  { %v46_v3 = vperm.slane %v44_v1, 0  ;;  %v47_v4 = vperm.slane %v44_v1, 1  ;;  %v48_v6 = vperm.slane %v44_v1, 2  ;;  %v49_v8 = vperm.slane %v44_v1, 3 }
   0xf   :  { %v54_v9 = vmul.f32 %v46_v3, %v40_v0  ;;  %v55_v10 = vmul.f32 %v47_v4, %v41_v2  ;;  %v56_v11 = vmul.f32 %v48_v6, %v42_v5  ;;  %v57_v12 = vmul.f32 %v49_v8, %v43_v7 }
  0x11   :  { %58 = vst [vmem:[#allocation7] sm:$0xff] %v54_v9 }
  0x12   :  { %59 = vst [vmem:[#allocation7 + $0x8] sm:$0xff] %v55_v10 }
  0x13   :  { %60 = vst [vmem:[#allocation7 + $0x10] sm:$0xff] %v56_v11 }
  0x14   :  { %61 = vst [vmem:[#allocation7 + $0x18] sm:$0xff] %v57_v12 }
  0x15   :  { %72 = dma.vmem_to_hbm [thread:$0]  %s68_s1, 512, %s70_s21, [#allocation4]  }
  0x16   :  { %159 = dma.done.wait [#allocation4], 512  }
  0x17   :  { %160 = vsyncadd [#allocation4], 4294966784 }
  0x18   :  { %77 = vsyncpa [#allocation3], 1 }
  0x19   :  { %78 = vsyncpa [#allocation6], 1 }
  0x1a   :  { %79 = vsyncpa [#allocation4], 1 }

</bundles_post_ra>
